<compile_context>
chip_gen: v6e
topology: v6e:2x2x1
jax: 0.10.0
libtpu: 0.0.40
codegen_flags: <defaults>
</compile_context>

<pallas_src>
import jax
import jax.numpy as jnp
from jax.experimental import pallas as pl
from jax.experimental.pallas import tpu as pltpu


def generator_kernel(x_ref, w1_ref, b1_ref, w2_ref, b2_ref, w3_ref, b3_ref, o_ref):
    # Layer 1: Linear(Din, 256) + ReLU.  bf16 operands, f32 accumulation (MXU).
    h = jnp.dot(x_ref[...], w1_ref[...], preferred_element_type=jnp.float32)
    h = jnp.maximum(h + b1_ref[...], 0.0)
    # Layer 2: Linear(256, 256) + ReLU.
    h = jnp.dot(h.astype(jnp.bfloat16), w2_ref[...], preferred_element_type=jnp.float32)
    h = jnp.maximum(h + b2_ref[...], 0.0)
    # Layer 3: Linear(256, Dout).
    y = jnp.dot(h.astype(jnp.bfloat16), w3_ref[...], preferred_element_type=jnp.float32)
    y = y + b3_ref[...]
    # Numerically stable sigmoid: exp of non-positive magnitude only, and a
    # single approx reciprocal (EUP) instead of two divides.
    z = jnp.exp(-jnp.abs(y))
    r = pl.reciprocal(1.0 + z, approx=True)
    s = jnp.where(y >= 0.0, r, z * r)
    # Approx reciprocal can overshoot 1 by ~2^-12; clamp to keep sigmoid range.
    o_ref[...] = jnp.minimum(s, 1.0)


def _pick_batch_tile(batch, max_tile):
    """Largest multiple-of-8 divisor of `batch` <= max_tile, preferring >= 2 grid
    steps (so the batch axis can shard across both TensorCores on v7x)."""
    divisors = [t for t in range(8, min(batch, max_tile) + 1, 8) if batch % t == 0]
    if not divisors:
        return batch
    multi_step = [t for t in divisors if batch // t >= 2]
    return max(multi_step) if multi_step else max(divisors)


def generator_forward(x, w1, b1, w2, b2, w3, b3, *, max_batch_tile=2048):
    """Fused 3-layer MLP forward.

    x  : [B, Din] float32
    w* : PyTorch nn.Linear layout [out, in]; b* : [out]
    returns [B, Dout] float32 in [0, 1].
    """
    orig_B, Din = x.shape
    H1, H2, Dout = w1.shape[0], w2.shape[0], w3.shape[0]

    # Lane-align the layer-1 contraction dim (zero-pad x cols and W1 rows).
    k_pad = (-Din) % 128
    w1_t = jnp.pad(w1.T, ((0, k_pad), (0, 0))) if k_pad else w1.T
    x_p = jnp.pad(x, ((0, 0), (0, k_pad))) if k_pad else x
    Din_p = Din + k_pad

    # Pad batch to a multiple of 8 sublanes so a tile always divides it.
    b_pad = (-orig_B) % 8
    if b_pad:
        x_p = jnp.pad(x_p, ((0, b_pad), (0, 0)))
    B = orig_B + b_pad

    tb = _pick_batch_tile(B, max_batch_tile)

    # bf16 matmul operands (f32 accumulation inside the kernel); biases stay f32.
    x_bf = x_p.astype(jnp.bfloat16)
    w1_bf = w1_t.astype(jnp.bfloat16)
    w2_bf = w2.T.astype(jnp.bfloat16)
    w3_bf = w3.T.astype(jnp.bfloat16)
    b1_r = b1.astype(jnp.float32).reshape(1, H1)
    b2_r = b2.astype(jnp.float32).reshape(1, H2)
    b3_r = b3.astype(jnp.float32).reshape(1, Dout)

    cost = pl.CostEstimate(
        flops=2 * B * (Din_p * H1 + H1 * H2 + H2 * Dout),
        transcendentals=B * Dout,
        bytes_accessed=(x_bf.size * 2
                        + (w1_bf.size + w2_bf.size + w3_bf.size) * 2
                        + (H1 + H2 + Dout) * 4
                        + B * Dout * 4),
    )

    out = pl.pallas_call(
        generator_kernel,
        out_shape=jax.ShapeDtypeStruct((B, Dout), jnp.float32),
        grid_spec=pltpu.PrefetchScalarGridSpec(
            num_scalar_prefetch=0,
            grid=(B // tb,),
            in_specs=[
                pl.BlockSpec((tb, Din_p), lambda i: (i, 0)),   # x tile (batch-tiled)
                pl.BlockSpec((Din_p, H1), lambda i: (0, 0)),   # W1 (VMEM-resident)
                pl.BlockSpec((1, H1), lambda i: (0, 0)),       # b1
                pl.BlockSpec((H1, H2), lambda i: (0, 0)),      # W2 (VMEM-resident)
                pl.BlockSpec((1, H2), lambda i: (0, 0)),       # b2
                pl.BlockSpec((H2, Dout), lambda i: (0, 0)),    # W3 (VMEM-resident)
                pl.BlockSpec((1, Dout), lambda i: (0, 0)),     # b3
            ],
            out_specs=pl.BlockSpec((tb, Dout), lambda i: (i, 0)),
        ),
        compiler_params=pltpu.CompilerParams(
            dimension_semantics=("parallel",)),  # batch axis -> both TCs on v7x
        cost_estimate=cost,
    )(x_bf, w1_bf, b1_r, w2_bf, b2_r, w3_bf, b3_r)

    return out[:orig_B] if b_pad else out


if __name__ == "__main__":
    # Hidden width 256 is fixed by the module; pick lane-friendly input/output
    # sizes and a small batch.
    input_size, hidden, output_size = 64, 256, 128
    B = 256

    key = jax.random.PRNGKey(0)
    k = jax.random.split(key, 7)

    x = jax.random.normal(k[0], (B, input_size), jnp.float32)

    # Parameters in PyTorch nn.Linear layout: weight [out, in], bias [out].
    w1 = jax.random.normal(k[1], (hidden, input_size), jnp.float32) / jnp.sqrt(input_size)
    b1 = jax.random.normal(k[2], (hidden,), jnp.float32) * 0.01
    w2 = jax.random.normal(k[3], (hidden, hidden), jnp.float32) / jnp.sqrt(hidden)
    b2 = jax.random.normal(k[4], (hidden,), jnp.float32) * 0.01
    w3 = jax.random.normal(k[5], (output_size, hidden), jnp.float32) / jnp.sqrt(hidden)
    b3 = jax.random.normal(k[6], (output_size,), jnp.float32) * 0.01

    out = generator_forward(x, w1, b1, w2, b2, w3, b3)
    jax.block_until_ready(out)

    # Pure-JAX f32 reference (same math as the PyTorch module).
    h_ref = jnp.maximum(x @ w1.T + b1, 0.0)
    h_ref = jnp.maximum(h_ref @ w2.T + b2, 0.0)
    ref = jax.nn.sigmoid(h_ref @ w3.T + b3)

    assert out.shape == (B, output_size)
    assert bool(jnp.all(jnp.isfinite(out)))
    assert bool(jnp.all((out >= 0.0) & (out <= 1.0)))
    # bf16 matmul operands + approx reciprocal -> compare at a slightly relaxed
    # tolerance against the f32 reference.
    assert bool(jnp.allclose(out, ref, atol=2e-2, rtol=2e-2)), \
        float(jnp.max(jnp.abs(out - ref)))
    print("KERNEL_OK")
</pallas_src>

<mosaic_0001>
module attributes {stable_mosaic.version = 11 : i64} {
  func.func @generator_kernel(%arg0: i32, %arg1: memref<128x128xbf16, #tpu.memory_space<vmem>>, %arg2: memref<128x256xbf16, #tpu.memory_space<vmem>>, %arg3: memref<1x256xf32, #tpu.memory_space<vmem>>, %arg4: memref<256x256xbf16, #tpu.memory_space<vmem>>, %arg5: memref<1x256xf32, #tpu.memory_space<vmem>>, %arg6: memref<256x128xbf16, #tpu.memory_space<vmem>>, %arg7: memref<1x128xf32, #tpu.memory_space<vmem>>, %arg8: memref<128x128xf32, #tpu.memory_space<vmem>>) attributes {dimension_semantics = [#tpu.dimension_semantics<parallel>], iteration_bounds = array<i64: 2>, scalar_prefetch = 0 : i64, scratch_operands = 0 : i64, tpu.core_type = #tpu.core_type<tc>, window_params = [{transform_indices = @transform_0, window_bounds = array<i64: 128, 128>}, {pipeline_mode = #tpu.pipeline_mode<synchronous>, transform_indices = @transform_1, window_bounds = array<i64: 128, 256>}, {pipeline_mode = #tpu.pipeline_mode<synchronous>, transform_indices = @transform_2, window_bounds = array<i64: 1, 256>}, {pipeline_mode = #tpu.pipeline_mode<synchronous>, transform_indices = @transform_3, window_bounds = array<i64: 256, 256>}, {pipeline_mode = #tpu.pipeline_mode<synchronous>, transform_indices = @transform_4, window_bounds = array<i64: 1, 256>}, {pipeline_mode = #tpu.pipeline_mode<synchronous>, transform_indices = @transform_5, window_bounds = array<i64: 256, 128>}, {pipeline_mode = #tpu.pipeline_mode<synchronous>, transform_indices = @transform_6, window_bounds = array<i64: 1, 128>}, {transform_indices = @transform_7, window_bounds = array<i64: 128, 128>}]} {
    %c0 = arith.constant 0 : index
    %c0_0 = arith.constant 0 : index
    %0 = vector.load %arg1[%c0, %c0_0] : memref<128x128xbf16, #tpu.memory_space<vmem>>, vector<128x128xbf16>
    %c0_1 = arith.constant 0 : index
    %c0_2 = arith.constant 0 : index
    %1 = vector.load %arg2[%c0_1, %c0_2] : memref<128x256xbf16, #tpu.memory_space<vmem>>, vector<128x256xbf16>
    %cst = arith.constant dense<0.000000e+00> : vector<128x256xf32>
    %2 = tpu.matmul %0, %1, %cst {dimension_numbers = #tpu.dot_dimension_numbers<[1], [0], [0], [1], [0, 0, 1, 1], [], []>} : vector<128x128xbf16>, vector<128x256xbf16>, vector<128x256xf32> -> vector<128x256xf32>
    %c0_3 = arith.constant 0 : index
    %c0_4 = arith.constant 0 : index
    %3 = vector.load %arg3[%c0_3, %c0_4] : memref<1x256xf32, #tpu.memory_space<vmem>>, vector<1x256xf32>
    %4 = vector.broadcast %3 : vector<1x256xf32> to vector<128x256xf32>
    %5 = arith.addf %2, %4 : vector<128x256xf32>
    %cst_5 = arith.constant 0.000000e+00 : f32
    %6 = vector.broadcast %cst_5 : f32 to vector<128x256xf32>
    %7 = arith.maximumf %5, %6 : vector<128x256xf32>
    %8 = arith.truncf %7 : vector<128x256xf32> to vector<128x256xbf16>
    %c0_6 = arith.constant 0 : index
    %c0_7 = arith.constant 0 : index
    %9 = vector.load %arg4[%c0_6, %c0_7] : memref<256x256xbf16, #tpu.memory_space<vmem>>, vector<256x256xbf16>
    %cst_8 = arith.constant dense<0.000000e+00> : vector<128x256xf32>
    %10 = tpu.matmul %8, %9, %cst_8 {dimension_numbers = #tpu.dot_dimension_numbers<[1], [0], [0], [1], [0, 0, 1, 1], [], []>} : vector<128x256xbf16>, vector<256x256xbf16>, vector<128x256xf32> -> vector<128x256xf32>
    %c0_9 = arith.constant 0 : index
    %c0_10 = arith.constant 0 : index
    %11 = vector.load %arg5[%c0_9, %c0_10] : memref<1x256xf32, #tpu.memory_space<vmem>>, vector<1x256xf32>
    %12 = vector.broadcast %11 : vector<1x256xf32> to vector<128x256xf32>
    %13 = arith.addf %10, %12 : vector<128x256xf32>
    %cst_11 = arith.constant 0.000000e+00 : f32
    %14 = vector.broadcast %cst_11 : f32 to vector<128x256xf32>
    %15 = arith.maximumf %13, %14 : vector<128x256xf32>
    %16 = arith.truncf %15 : vector<128x256xf32> to vector<128x256xbf16>
    %c0_12 = arith.constant 0 : index
    %c0_13 = arith.constant 0 : index
    %17 = vector.load %arg6[%c0_12, %c0_13] : memref<256x128xbf16, #tpu.memory_space<vmem>>, vector<256x128xbf16>
    %cst_14 = arith.constant dense<0.000000e+00> : vector<128x128xf32>
    %18 = tpu.matmul %16, %17, %cst_14 {dimension_numbers = #tpu.dot_dimension_numbers<[1], [0], [0], [1], [0, 0, 1, 1], [], []>} : vector<128x256xbf16>, vector<256x128xbf16>, vector<128x128xf32> -> vector<128x128xf32>
    %c0_15 = arith.constant 0 : index
    %c0_16 = arith.constant 0 : index
    %19 = vector.load %arg7[%c0_15, %c0_16] : memref<1x128xf32, #tpu.memory_space<vmem>>, vector<1x128xf32>
    %20 = vector.broadcast %19 : vector<1x128xf32> to vector<128x128xf32>
    %21 = arith.addf %18, %20 : vector<128x128xf32>
    %22 = math.absf %21 : vector<128x128xf32>
    %cst_17 = arith.constant 0.000000e+00 : f32
    %23 = vector.broadcast %cst_17 : f32 to vector<128x128xf32>
    %24 = arith.subf %23, %22 : vector<128x128xf32>
    %25 = math.exp %24 : vector<128x128xf32>
    %cst_18 = arith.constant 1.000000e+00 : f32
    %26 = vector.broadcast %cst_18 : f32 to vector<128x128xf32>
    %27 = arith.addf %26, %25 : vector<128x128xf32>
    %28 = tpu.reciprocal %27 {approx = true} : vector<128x128xf32> -> vector<128x128xf32>
    %cst_19 = arith.constant 0.000000e+00 : f32
    %29 = vector.broadcast %cst_19 : f32 to vector<128x128xf32>
    %30 = arith.cmpf oge, %21, %29 : vector<128x128xf32>
    %31 = arith.mulf %25, %28 : vector<128x128xf32>
    %32 = arith.select %30, %28, %31 : vector<128x128xi1>, vector<128x128xf32>
    %cst_20 = arith.constant 1.000000e+00 : f32
    %33 = vector.broadcast %cst_20 : f32 to vector<128x128xf32>
    %34 = arith.minimumf %32, %33 : vector<128x128xf32>
    %c0_21 = arith.constant 0 : index
    %c0_22 = arith.constant 0 : index
    %35 = vector.load %arg8[%c0_21, %c0_22] : memref<128x128xf32, #tpu.memory_space<vmem>>, vector<128x128xf32>
    tpu.vector_store %arg8[%c0_21, %c0_22], %34 {strides = array<i32>} : memref<128x128xf32, #tpu.memory_space<vmem>>, vector<128x128xf32>,
    return
  }
  func.func @transform_0(%arg0: i32) -> (i32, i32) {
    %c0_i32 = arith.constant 0 : i32
    %c0_i32_0 = arith.constant 0 : i32
    return %arg0, %c0_i32 : i32, i32
  }
  func.func @transform_1(%arg0: i32) -> (i32, i32) {
    %c0_i32 = arith.constant 0 : i32
    %c0_i32_0 = arith.constant 0 : i32
    %c0_i32_1 = arith.constant 0 : i32
    return %c0_i32, %c0_i32_0 : i32, i32
  }
  func.func @transform_2(%arg0: i32) -> (i32, i32) {
    %c0_i32 = arith.constant 0 : i32
    %c0_i32_0 = arith.constant 0 : i32
    %c0_i32_1 = arith.constant 0 : i32
    return %c0_i32, %c0_i32_0 : i32, i32
  }
  func.func @transform_3(%arg0: i32) -> (i32, i32) {
    %c0_i32 = arith.constant 0 : i32
    %c0_i32_0 = arith.constant 0 : i32
    %c0_i32_1 = arith.constant 0 : i32
    return %c0_i32, %c0_i32_0 : i32, i32
  }
  func.func @transform_4(%arg0: i32) -> (i32, i32) {
    %c0_i32 = arith.constant 0 : i32
    %c0_i32_0 = arith.constant 0 : i32
    %c0_i32_1 = arith.constant 0 : i32
    return %c0_i32, %c0_i32_0 : i32, i32
  }
  func.func @transform_5(%arg0: i32) -> (i32, i32) {
    %c0_i32 = arith.constant 0 : i32
    %c0_i32_0 = arith.constant 0 : i32
    %c0_i32_1 = arith.constant 0 : i32
    return %c0_i32, %c0_i32_0 : i32, i32
  }
  func.func @transform_6(%arg0: i32) -> (i32, i32) {
    %c0_i32 = arith.constant 0 : i32
    %c0_i32_0 = arith.constant 0 : i32
    %c0_i32_1 = arith.constant 0 : i32
    return %c0_i32, %c0_i32_0 : i32, i32
  }
  func.func @transform_7(%arg0: i32) -> (i32, i32) {
    %c0_i32 = arith.constant 0 : i32
    %c0_i32_0 = arith.constant 0 : i32
    return %arg0, %c0_i32 : i32, i32
  }
}

</mosaic_0001>

<bundles_post_ra>
// kernel: tpu_custom_call.1
= control target key start
LH: loop header
LB: loop body
LE: loop exit
PB: predicated region body
PF: predicated region fallthrough
CT: control target
= control target key end

     0   :  { %s2668_s0 = inlined_call_operand.hbm [shape: bf16[256,128], index: 0, kind: input, shape index: {}]   ;;  %s2669_s1 = inlined_call_operand.hbm [shape: bf16[128,256], index: 1, kind: input, shape index: {}]   ;;  %s2670_s2 = inlined_call_operand.vmem [shape: f32[1,256], index: 2, kind: input, shape index: {}]   ;;  %s2671_s3 = inlined_call_operand.hbm [shape: bf16[256,256], index: 3, kind: input, shape index: {}]   ;;  %s2672_s4 = inlined_call_operand.vmem [shape: f32[1,256], index: 4, kind: input, shape index: {}]   ;;  %s2673_s5 = inlined_call_operand.hbm [shape: bf16[256,128], index: 5, kind: input, shape index: {}]   ;;  %s2674_s6 = inlined_call_operand.vmem [shape: f32[1,128], index: 6, kind: input, shape index: {}]   ;;  %s2675_s7 = inlined_call_operand.hbm [shape: f32[256,128], index: 7, kind: output, shape index: {}]  }
   0x1   :  { %2682 = sst [smem:[#allocation15_spill]] %s2669_s1 }
   0x2   :  { %12 = vsyncpa [#allocation3], 0 }
   0x3   :  { %14 = vsyncpa [#allocation3 + $0x1], 0 }
   0x4   :  { %15 = vsyncpa [#allocation6], 0 }
   0x5   :  { %16 = vsyncpa [#allocation9], 0 }
   0x6   :  { %17 = vsyncpa [#allocation4], 0 }
   0x7   :  { %19 = vsyncpa [#allocation4 + $0x1], 0  ;;  %s2217_s24 = smov 0   ;;  %s2219_s25 = smov 0  }
   0x8   :  { %s2221_s26 = smov 0   ;;  %s2223_s27 = smov 0  }
   0x9 LB: > { %s2238_s28 = sadd.s32 4294967295, %s2163_s27   ;;  %s1566_s29 = sadd.s32 4294967294, %s2163_s27   ;;  %s2163_s27 = sphi %s2223_s27, %s2705_s27   ;;  %s2159_s26 = sphi %s2221_s26, %s2704_s26   ;;  %s2155_s25 = sphi %s2219_s25, %s2703_s25   ;;  %s2151_s24 = sphi %s2217_s24, %s2702_s24  }
   0xa   : > { %p45_p0 = scmp.ne.s32.totalorder %s2155_s25, %s2151_s24  ;;  %p2676_p1 = scmp.eq.s32.totalorder %s2238_s28, 0 }
   0xb   : > { %p201_p3 = scmp.eq.s32.totalorder %s1566_s29, 1  ;;  %p1567_p5 = scmp.ge.s32.totalorder %s2163_s27, 1 }
   0xc   : > { %p2247_p4 = por %p2676_p1, %p45_p0  ;;  %p208_p7 = scmp.lt.s32.totalorder %s2163_s27, 3 }
   0xd   : > { %p2252_p6 = por %p201_p3, %p45_p0  ;;  %s2165_s10 = smov [#allocation5]  }
   0xe   : > { %s2683_s30 = scalar_select %p2247_p4, 1, 0 }
   0xf   : > { %s2684_s8 = scalar_select %p2252_p6, 1, 0 }
  0x10   : > { %p2257_p8 = pnand %p1567_p5, %p208_p7  ;;  %s220_s11 = sshll.u32 %s2165_s10, 4  ;;  %s221_s11 = int_to_ptr.vmem [resolvable:$true] %s220_s11 }
  0x11   : > { %s2166_s13 = smov [#allocation7]   ;;  %s2167_s15 = smov [#allocation8]  }
  0x12   : > { %s2685_s9 = scalar_select %p2257_p8, 1, 0 }
  0x13   : > { %p1757_p9 = pneg %p2257_p8  ;;  %s236_s14 = sshll.u32 %s2166_s13, 4  ;;  %s237_s14 = int_to_ptr.vmem [resolvable:$true] %s236_s14 }
  0x14   : > { %s252_s16 = sshll.u32 %s2167_s15, 4  ;;  %s1996_s17 = scalar_lea.vmem %s221_s11, 2048  ;;  %s253_s16 = int_to_ptr.vmem [resolvable:$true] %s252_s16 }
  0x15   : > { %p2266_p11 = pnand %p1757_p9, %p2676_p1  ;;  %p1997_p13 = scmp.ne.s32.totalorder %s221_s11, %s1996_s17 }
  0x16   : > { %p2004_p5 = scmp.lt.s32.totalorder %s221_s11, %s221_s11  ;;  %p2005_p7 = scmp.lt.s32.totalorder %s1996_s17, %s1996_s17 }
  0x17   : > { %p1987_p12 = pneg %p2266_p11 }
  0x18   : > { %p2006_p9 = por %p2005_p7, %p2004_p5 }
  0x19   : > { %p1999_p0 = pnand %p1997_p13, %p1987_p12 }
  0x1b   : > { %p2000_p3 = pneg %p1999_p0 }
  0x1d   : > { %p2007_p10 = pnand %p2006_p9, %p2000_p3 }
  0x1f   : > { %2010 = shalt.err (!%p2007_p10)
}
  0x20   : > { %s2168_s18 = smov 128   ;;  %s2169_s19 = smov 8  }
  0x21   : > { %s2687_s1 = sld [smem:[#allocation15_spill]]  ;;  %s2022_s22 = scalar_lea.vmem %s237_s14, 4096 }
  0x22   : > { %p2023_p1 = scmp.ne.s32.totalorder %s237_s14, %s2022_s22  ;;  %p2030_p2 = scmp.lt.s32.totalorder %s237_s14, %s237_s14 }
  0x23   : > { %p2031_p6 = scmp.lt.s32.totalorder %s2022_s22, %s2022_s22 }
  0x24   : > { %p2025_p13 = pnand %p2023_p1, %p1987_p12 }
  0x25   : > { %p2032_p5 = por %p2031_p6, %p2030_p2 }
  0x26   : > { %p2026_p0 = pneg %p2025_p13 }
  0x27   : > { %1760 = dma.hbm_to_vmem [thread:$0]  (!%p2266_p11), %s2687_s1, 2048, %s221_s11, [#allocation6], %s2168_s18, %s2168_s18, %s2169_s19  }
  0x28   : > { %p2033_p3 = pnand %p2032_p5, %p2026_p0 }
  0x2a   : > { %2036 = shalt.err (!%p2033_p3)
}
  0x2b   : > { %1763 = dma.hbm_to_vmem [thread:$0]  (!%p2266_p11), %s2671_s3, 4096, %s237_s14, [#allocation6], %s2168_s18, %s2168_s18, %s2169_s19  }
  0x2c   : > { %s2048_s10 = scalar_lea.vmem %s253_s16, 2048  ;;  %p2056_p9 = scmp.lt.s32.totalorder %s253_s16, %s253_s16 }
  0x2d   : > { %p2049_p10 = scmp.ne.s32.totalorder %s253_s16, %s2048_s10  ;;  %p2057_p13 = scmp.lt.s32.totalorder %s2048_s10, %s2048_s10 }
  0x2f   : > { %p2051_p7 = pnand %p2049_p10, %p1987_p12  ;;  %p2058_p4 = por %p2057_p13, %p2056_p9 }
  0x31   : > { %p2052_p1 = pneg %p2051_p7 }
  0x33   : > { %p2059_p2 = pnand %p2058_p4, %p2052_p1 }
  0x35   : > { %2062 = shalt.err (!%p2059_p2)
}
  0x36   : > { %s2678_s11 = smov 64   ;;  %s2679_s13 = smov 4  }
  0x37   : > { %1766 = dma.hbm_to_vmem [thread:$0]  (!%p2266_p11), %s2673_s5, 2048, %s253_s16, [#allocation9], %s2678_s11, %s2678_s11, %s2679_s13  }
  0x38   : > { %s2300_s17 = sadd.s32 1, %s2163_s27   ;;  %s32_s19 = sadd.s32 1, %s2159_s26 }
  0x39   : > { %s29_s18 = ssub.s32 %s2163_s27, %s2300_s17  ;;  %p39_p6 = scmp.ne.s32.totalorder %s2159_s26, %s2155_s25 }
  0x3a   : > { %p30_p4 = scmp.eq.s32.totalorder %s29_s18, 0  ;;  %p40_p12 = scmp.eq.s32.totalorder %s2163_s27, 0 }
  0x3b   : > { %p1778_p0 = scmp.lt.s32.totalorder %s2163_s27, 2  ;;  %p2688_p3 = scmp.eq.s32.totalorder %s2238_s28, 1 }
  0x3c   : > { %s2310_s20 = scalar_select %p30_p4, %s2159_s26, %s32_s19  }
  0x3d   : > { %p41_p5 = por %p40_p12, %p39_p6  ;;  %p2314_p10 = por %p2688_p3, %p39_p6 }
  0x3e   : > { %s269_s21 = sand.u32 1, %s2159_s26   ;;  %s1659_s22 = sshll.u32 %s2163_s27, 10 }
  0x3f   : > { %s2689_s12 = scalar_select %p2314_p10, 1, 0 }
  0x40   : > { %s1572_s16 = sshll.u32 %s269_s21, 6  ;;  %s2323_s10 = scalar_lea.hbm %s2668_s0, %s1659_s22 }
  0x41   : > { %s273_s14 = scalar_lea.vmem [#allocation2], %s1572_s16  ;;  %p2325_p11 = pnand %p1778_p0, %p41_p5 }
  0x42   : > { %s280_s15 = sshll.u32 %s273_s14, 4  ;;  %s2331_s19 = scalar_lea.sflag [#allocation3], %s269_s21  ;;  %s2329_s15 = int_to_ptr.vmem [resolvable:$true] %s280_s15 }
  0x43   : > { %s2063_s11 = scalar_lea.hbm %s2323_s10, 1024  ;;  %p2065_p1 = pneg %p2325_p11 }
  0x44   : > { %p2064_p7 = scmp.ne.s32.totalorder %s2323_s10, %s2063_s11  ;;  %s2068_s16 = scalar_lea.hbm %s2668_s0, 2048 }
  0x45   : > { %p2069_p2 = scmp.lt.s32.totalorder %s2323_s10, %s2668_s0  ;;  %p2070_p4 = scmp.lt.s32.totalorder %s2068_s16, %s2063_s11 }
  0x46   : > { %p2066_p9 = pnand %p2065_p1, %p2064_p7 }
  0x47   : > { %p2071_p6 = por %p2070_p4, %p2069_p2 }
  0x48   : > { %p2067_p13 = pneg %p2066_p9 }
  0x4a   : > { %p2072_p12 = pnand %p2071_p6, %p2067_p13 }
  0x4c   : > { %2075 = shalt.err (!%p2072_p12)
}
  0x4d   : > { %s2076_s21 = scalar_lea.vmem %s2329_s15, 1024  ;;  %s2172_s13 = smov [#allocation2]  }
  0x4e   : > { %p2077_p0 = scmp.ne.s32.totalorder %s2329_s15, %s2076_s21  ;;  %s2081_s1 = sshll.u32 %s2172_s13, 4  ;;  %s2082_s1 = int_to_ptr.vmem [resolvable:$false] %s2081_s1 }
  0x4f   : > { %s2083_s22 = scalar_lea.vmem %s2082_s1, 2048  ;;  %p2084_p7 = scmp.lt.s32.totalorder %s2329_s15, %s2082_s1 }
  0x50   : > { %p2079_p5 = pnand %p2077_p0, %p2065_p1  ;;  %p2085_p9 = scmp.lt.s32.totalorder %s2083_s22, %s2076_s21 }
  0x52   : > { %p2080_p3 = pneg %p2079_p5  ;;  %p2086_p10 = por %p2085_p9, %p2084_p7 }
  0x54   : > { %p2087_p8 = pnand %p2086_p10, %p2080_p3 }
  0x56   : > { %2090 = shalt.err (!%p2087_p8)
}
  0x57   : > { %s2691_s11 = smov 4   ;;  %s2692_s23 = smov 64  }
  0x58   : > { %1770 = dma.hbm_to_vmem [thread:$0]  (!%p2325_p11), %s2323_s10, 1024, %s2329_s15, %s2331_s19, %s2692_s23, %s2692_s23, %s2691_s11  }
  0x59   : > { %p2693_p1 = scmp.ne.s32.totalorder %s2685_s9, 0 }
  0x5a   : > { %s2358_s13 = sand.u32 (!%p2693_p1), 1, %s2155_s25   ;;  %p2694_p8 = scmp.ne.s32.totalorder (!%p2693_p1), %s2683_s30, 0 }
  0x5b   : > { %292 = sbr.rel (%p2693_p1) target bundleno = 863 (0x35f), region = 48  ;;  %s1576_s1 = sshll.u32 (!%p2693_p1), %s2358_s13, 6 }
  0x5c   : > { %s295_s16 = scalar_lea.sflag (!%p2693_p1), [#allocation3], %s2358_s13  ;;  %s2362_s29 = scalar_lea.vmem (!%p2693_p1), [#allocation2], %s1576_s1 }
  0x60   : > { %2134 = dma.done.wait (%p2694_p8), %s295_s16, 1024  }
  0x61   : > { %2136 = vsyncadd (%p2694_p8), %s295_s16, 4294966272  ;;  %p2695_p10 = scmp.eq.s32.totalorder %s2238_s28, 0 }
  0x63   : > { %2138 = dma.done.wait (%p2695_p10), [#allocation6], 6144   ;;  %p2696_p11 = pmov %p2695_p10 }
  0x64   : > { %p2697_p13 = pmov %p2695_p10 }
  0x65   : > { %2140 = vsyncadd (%p2696_p11), [#allocation6], 4294961152 }
  0x66   : > { %2142 = dma.done.wait (%p2697_p13), [#allocation9], 2048   ;;  %p2698_p2 = pmov %p2695_p10 }
  0x67   : > { %v2173_v0 = vmov 0   ;;  %v1825_v1 = vld [vmem:[#allocation5 + $0x74] ss:$8 sps:$4 sm:$0xff]   ;;  %v1827_v2 = vld [vmem:[#allocation5 + $0x70] ss:$8 sps:$4 sm:$0xff]   ;;  %v1849_v24 = vld [vmem:[%s2362_s29] sm:$0xff]  }
  0x68   : > { %2144 = vsyncadd (%p2698_p2), [#allocation9], 4294965248  ;;  %548 = vmatprep.mubr.bf16.mxu0 %v2173_v0  ;;  %516 = vmatprep.subr.bf16.mxu0 %v1825_v1  ;;  %v1828_v3 = vld [vmem:[#allocation5 + $0x64] ss:$8 sps:$4 sm:$0xff]   ;;  %v1830_v4 = vld [vmem:[#allocation5 + $0x60] ss:$8 sps:$4 sm:$0xff]  }
  0x69   : > { %517 = vmatpush1.bf16.msra.mxu0 %v1827_v2  ;;  %v1831_v5 = vld [vmem:[#allocation5 + $0x54] ss:$8 sps:$4 sm:$0xff]   ;;  %v1833_v6 = vld [vmem:[#allocation5 + $0x50] ss:$8 sps:$4 sm:$0xff]   ;;  %v1834_v7 = vld [vmem:[#allocation5 + $0x44] ss:$8 sps:$4 sm:$0xff]  }
  0x6a   : > { %518 = vmatprep.subr.bf16.mxu0 %v1828_v3  ;;  %v1836_v8 = vld [vmem:[#allocation5 + $0x40] ss:$8 sps:$4 sm:$0xff]   ;;  %v1837_v9 = vld [vmem:[#allocation5 + $0x34] ss:$8 sps:$4 sm:$0xff]   ;;  %v1839_v10 = vld [vmem:[#allocation5 + $0x30] ss:$8 sps:$4 sm:$0xff]   ;;  %v378_v3 = vlaneseq }
  0x6b   : > { %v1840_v11 = vld [vmem:[#allocation5 + $0x24] ss:$8 sps:$4 sm:$0xff]   ;;  %v1842_v12 = vld [vmem:[#allocation5 + $0x20] ss:$8 sps:$4 sm:$0xff]   ;;  %v1843_v13 = vld [vmem:[#allocation5 + $0x14] ss:$8 sps:$4 sm:$0xff]  }
  0x6c   : > { %v1857_v14 = vld [vmem:[#allocation7 + $0x74] ss:$8 sps:$4 sm:$0xff]   ;;  %v1859_v15 = vld [vmem:[#allocation7 + $0x70] ss:$8 sps:$4 sm:$0xff]   ;;  %v1860_v16 = vld [vmem:[#allocation7 + $0x64] ss:$8 sps:$4 sm:$0xff]  }
  0x6d   : > { %519 = vmatpush1.bf16.msra.mxu0 %v1830_v4  ;;  %881 = vmatprep.subr.bf16.mxu1 %v1857_v14  ;;  %v1862_v17 = vld [vmem:[#allocation7 + $0x60] ss:$8 sps:$4 sm:$0xff]   ;;  %v1845_v18 = vld [vmem:[#allocation5 + $0x10] ss:$8 sps:$4 sm:$0xff]   ;;  %v1863_v19 = vld [vmem:[#allocation7 + $0x54] ss:$8 sps:$4 sm:$0xff]  }
  0x6e   : > { %520 = vmatprep.subr.bf16.mxu0 %v1831_v5  ;;  %882 = vmatpush1.bf16.msra.mxu1 %v1859_v15  ;;  %v1846_v20 = vld [vmem:[#allocation5 + $0x4] ss:$8 sps:$4 sm:$0xff]   ;;  %v1865_v21 = vld [vmem:[#allocation7 + $0x50] ss:$8 sps:$4 sm:$0xff]   ;;  %v1848_v22 = vld [vmem:[#allocation5] ss:$8 sps:$4 sm:$0xff]  }
  0x6f   : > { %883 = vmatprep.subr.bf16.mxu1 %v1860_v16  ;;  %v1866_v23 = vld [vmem:[#allocation7 + $0x44] ss:$8 sps:$4 sm:$0xff]   ;;  %v1868_v25 = vld [vmem:[#allocation7 + $0x40] ss:$8 sps:$4 sm:$0xff]   ;;  %v1869_v26 = vld [vmem:[#allocation7 + $0x34] ss:$8 sps:$4 sm:$0xff]  }
  0x70   : > { %v1871_v27 = vld [vmem:[#allocation7 + $0x30] ss:$8 sps:$4 sm:$0xff]   ;;  %v1872_v28 = vld [vmem:[#allocation7 + $0x24] ss:$8 sps:$4 sm:$0xff]   ;;  %v1874_v30 = vld [vmem:[#allocation7 + $0x20] ss:$8 sps:$4 sm:$0xff]  }
  0x71   : > { %521 = vmatpush1.bf16.msra.mxu0 %v1833_v6  ;;  %v1850_v29 = vld [vmem:[%s2362_s29 + $0x8] sm:$0xff]   ;;  %v1875_v31 = vld [vmem:[#allocation7 + $0x14] ss:$8 sps:$4 sm:$0xff]   ;;  %v1877_v32 = vld [vmem:[#allocation7 + $0x10] ss:$8 sps:$4 sm:$0xff]   ;;  %v2401_v4 = vshrl.u32 %v378_v3, 7 }
  0x72   : > { %522 = vmatprep.subr.bf16.mxu0 %v1834_v7  ;;  %884 = vmatpush1.bf16.msra.mxu1 %v1862_v17  ;;  %v1878_v33 = vld [vmem:[#allocation7 + $0x4] ss:$8 sps:$4 sm:$0xff]   ;;  %v1851_v34 = vld [vmem:[%s2362_s29 + $0x10] sm:$0xff]   ;;  %v1880_v35 = vld [vmem:[#allocation7] ss:$8 sps:$4 sm:$0xff]   ;;  %s1580_s14 = sshll.u32 %s2358_s13, 7 }
  0x73   : > { %885 = vmatprep.subr.bf16.mxu1 %v1863_v19  ;;  %v1881_v36 = vld [vmem:[#allocation7 + $0xf4] ss:$8 sps:$4 sm:$0xff]   ;;  %v1883_v37 = vld [vmem:[#allocation7 + $0xf0] ss:$8 sps:$4 sm:$0xff]   ;;  %v1884_v38 = vld [vmem:[#allocation7 + $0xe4] ss:$8 sps:$4 sm:$0xff]  }
  0x74   : > { %v1852_v39 = vld [vmem:[%s2362_s29 + $0x18] sm:$0xff]   ;;  %v1886_v40 = vld [vmem:[#allocation7 + $0xe0] ss:$8 sps:$4 sm:$0xff]   ;;  %v1890_v43 = vld [vmem:[#allocation7 + $0xc4] ss:$8 sps:$4 sm:$0xff]   ;;  %v384_v5 = vsub.s32 1, %v2401_v4 }
  0x75   : > { %523 = vmatpush1.bf16.msra.mxu0 %v1836_v8  ;;  %v1887_v41 = vld [vmem:[#allocation7 + $0xd4] ss:$8 sps:$4 sm:$0xff]   ;;  %v1889_v42 = vld [vmem:[#allocation7 + $0xd0] ss:$8 sps:$4 sm:$0xff]   ;;  %v1853_v44 = vld [vmem:[%s2362_s29 + $0x20] sm:$0xff]   ;;  %v380_v6 = vsub.s32 0, %v2401_v4 }
  0x76   : > { %524 = vmatprep.subr.bf16.mxu0 %v1837_v9  ;;  %886 = vmatpush1.bf16.msra.mxu1 %v1865_v21  ;;  %v1892_v45 = vld [vmem:[#allocation7 + $0xc0] ss:$8 sps:$4 sm:$0xff]   ;;  %v1893_v46 = vld [vmem:[#allocation7 + $0xb4] ss:$8 sps:$4 sm:$0xff]   ;;  %v1895_v47 = vld [vmem:[#allocation7 + $0xb0] ss:$8 sps:$4 sm:$0xff]  }
  0x77   : > { %887 = vmatprep.subr.bf16.mxu1 %v1866_v23  ;;  %v1854_v48 = vld [vmem:[%s2362_s29 + $0x28] sm:$0xff]   ;;  %v1855_v49 = vld [vmem:[%s2362_s29 + $0x30] sm:$0xff]   ;;  %v1856_v50 = vld [vmem:[%s2362_s29 + $0x38] sm:$0xff]   ;;  %s2553_s21 = scalar_lea.vmem [#allocation10], %s1580_s14  ;;  %s1660_s22 = sshll.u32 %s2238_s28, 11 }
  0x78   : > { %v1896_v51 = vld [vmem:[#allocation7 + $0xa4] ss:$8 sps:$4 sm:$0xff]   ;;  %v1898_v52 = vld [vmem:[#allocation7 + $0xa0] ss:$8 sps:$4 sm:$0xff]   ;;  %v1899_v53 = vld [vmem:[#allocation7 + $0x94] ss:$8 sps:$4 sm:$0xff]   ;;  %s2622_s16 = scalar_lea.hbm %s2675_s7, %s1660_s22 }
  0x79   : > { %525 = vmatpush1.bf16.msra.mxu0 %v1839_v10  ;;  %v1901_v54 = vld [vmem:[#allocation7 + $0x90] ss:$8 sps:$4 sm:$0xff]   ;;  %v1902_v55 = vld [vmem:[#allocation7 + $0x84] ss:$8 sps:$4 sm:$0xff]   ;;  %v1904_v56 = vld [vmem:[#allocation7 + $0x80] ss:$8 sps:$4 sm:$0xff]  }
  0x7a   : > { %526 = vmatprep.subr.bf16.mxu0 %v1840_v11  ;;  %888 = vmatpush1.bf16.msra.mxu1 %v1868_v25  ;;  %v1905_v57 = vld [vmem:[#allocation8 + $0x78] sm:$0xff]   ;;  %v1907_v59 = vld [vmem:[#allocation8 + $0x70] sm:$0xff]   ;;  %v1909_v61 = vld [vmem:[#allocation8 + $0x68] sm:$0xff]   ;;  %s1464_s11 = sshll.u32 %s2553_s21, 4  ;;  %s1451_s29 = scalar_lea.sflag [#allocation4], %s2358_s13  ;;  %s2624_s11 = int_to_ptr.vmem [resolvable:$true] %s1464_s11 }
  0x7b   : > { %889 = vmatprep.subr.bf16.mxu1 %v1869_v26  ;;  %v1906_v58 = vld [vmem:[#allocation8 + $0x38] sm:$0xff]   ;;  %v1908_v60 = vld [vmem:[#allocation8 + $0x30] sm:$0xff]   ;;  %v1910_v62 = vld [vmem:[#allocation8 + $0x28] sm:$0xff]   ;;  %s2091_s28 = scalar_lea.vmem %s2624_s11, 2048  ;;  %p2699_p6 = scmp.ne.s32.totalorder %s2689_s12, 0 }
  0x7c   : > { %v1911_v63 = vld [vmem:[#allocation8 + $0x60] sm:$0xff]   ;;  %v2394_v1 = vld [vmem:[#allocation8 + $0x58] sm:$0xff]   ;;  %p2092_p4 = scmp.ne.s32.totalorder %s2624_s11, %s2091_s28  ;;  %s2174_s30 = smov [#allocation10]  }
  0x7d   : > { %527 = vmatpush1.bf16.msra.mxu0 %v1842_v12  ;;  %v2397_v2 = vld [vmem:[#allocation8 + $0x18] sm:$0xff]   ;;  %v376_v7 = vld [vmem:[%s2670_s2] sm:$0x3]  ;;  %s2095_s9 = sshll.u32 %s2174_s30, 4  ;;  %s2096_s9 = int_to_ptr.vmem [resolvable:$false] %s2095_s9 }
  0x7e   : > { %528 = vmatprep.subr.bf16.mxu0 %v1843_v13  ;;  %890 = vmatpush1.bf16.msra.mxu1 %v1871_v27  ;;  %v2410_v9 = vrot.slane %v376_v7, %v384_v5  ;;  %v2414_v10 = vrot.slane %v376_v7, %v380_v6  ;;  %p2093_p12 = pnand %p2092_p4, %p2699_p6  ;;  %s2097_s10 = scalar_lea.vmem %s2096_s9, 4096 }
  0x7f   : > { %891 = vmatprep.subr.bf16.mxu1 %v1872_v28  ;;  %p2098_p5 = scmp.lt.s32.totalorder %s2624_s11, %s2096_s9  ;;  %p2099_p3 = scmp.lt.s32.totalorder %s2097_s10, %s2091_s28 }
  0x80   : > { %p2094_p0 = pneg %p2093_p12 }
  0x81   : > { %529 = vmatpush1.bf16.msra.mxu0 %v1845_v18  ;;  %p2100_p7 = por %p2099_p3, %p2098_p5 }
  0x82   : > { %530 = vmatprep.subr.bf16.mxu0 %v1846_v20  ;;  %892 = vmatpush1.bf16.msra.mxu1 %v1874_v30 }
  0x83   : > { %893 = vmatprep.subr.bf16.mxu1 %v1875_v31  ;;  %p2101_p9 = pnand %p2100_p7, %p2094_p0 }
  0x85   : > { %531 = vmatpush1.bf16.msra.mxu0 %v1848_v22 }
  0x86   : > { %894 = vmatpush1.bf16.msra.mxu1 %v1877_v32  ;;  %1661 = vmatprep.subr.bf16.mxu0 %v1905_v57 }
  0x87   : > { %895 = vmatprep.subr.bf16.mxu1 %v1878_v33 }
  0x88   : > { %549 = vmatmul.mubr.bf16.vlgmr.msra.gmra.mxu0 %v1849_v24 }
  0x89   : > { %558 = vmatprep.mubr.bf16.mxu0 %v2173_v0  ;;  %1662 = vmatpush3.bf16.msra.mxu0 %v1906_v58 }
  0x8a   : > { %896 = vmatpush1.bf16.msra.mxu1 %v1880_v35  ;;  %1663 = vmatprep.subr.bf16.mxu0 %v1907_v59 }
  0x8b   : > { %897 = vmatprep.subr.bf16.mxu1 %v1881_v36 }
  0x8d   : > { %1664 = vmatpush3.bf16.msra.mxu0 %v1908_v60 }
  0x8e   : > { %898 = vmatpush2.bf16.msra.mxu1 %v1883_v37  ;;  %1665 = vmatprep.subr.bf16.mxu0 %v1909_v61 }
  0x8f   : > { %899 = vmatprep.subr.bf16.mxu1 %v1884_v38 }
  0x90   : > { %559 = vmatmul.mubr.bf16.gmra.mxu0 %v1850_v29 }
  0x91   : > { %568 = vmatprep.mubr.bf16.mxu0 %v2173_v0  ;;  %1666 = vmatpush3.bf16.msra.mxu0 %v1910_v62 }
  0x92   : > { %900 = vmatpush2.bf16.msra.mxu1 %v1886_v40  ;;  %1667 = vmatprep.subr.bf16.mxu0 %v1911_v63 }
  0x93   : > { %901 = vmatprep.subr.bf16.mxu1 %v1887_v41 }
  0x96   : > { %902 = vmatpush2.bf16.msra.mxu1 %v1889_v42 }
  0x97   : > { %903 = vmatprep.subr.bf16.mxu1 %v1890_v43 }
  0x98   : > { %569 = vmatmul.mubr.bf16.gmra.mxu0 %v1851_v34 }
  0x99   : > { %578 = vmatprep.mubr.bf16.mxu0 %v2173_v0 }
  0x9a   : > { %904 = vmatpush2.bf16.msra.mxu1 %v1892_v45 }
  0x9b   : > { %905 = vmatprep.subr.bf16.mxu1 %v1893_v46 }
  0x9e   : > { %906 = vmatpush2.bf16.msra.mxu1 %v1895_v47 }
  0x9f   : > { %907 = vmatprep.subr.bf16.mxu1 %v1896_v51 }
  0xa0   : > { %579 = vmatmul.mubr.bf16.gmra.mxu0 %v1852_v39 }
  0xa1   : > { %588 = vmatprep.mubr.bf16.mxu0 %v2173_v0 }
  0xa2   : > { %908 = vmatpush2.bf16.msra.mxu1 %v1898_v52 }
  0xa3   : > { %909 = vmatprep.subr.bf16.mxu1 %v1899_v53 }
  0xa6   : > { %910 = vmatpush2.bf16.msra.mxu1 %v1901_v54 }
  0xa7   : > { %911 = vmatprep.subr.bf16.mxu1 %v1902_v55 }
  0xa8   : > { %589 = vmatmul.mubr.bf16.gmra.mxu0 %v1853_v44 }
  0xa9   : > { %598 = vmatprep.mubr.bf16.mxu0 %v2173_v0 }
  0xaa   : > { %912 = vmatpush2.bf16.msra.mxu1 %v1904_v56 }
  0xab   : > { %1725 = vmatprep.subr.bf16.mxu1 %v1905_v57 }
  0xb0   : > { %599 = vmatmul.mubr.bf16.gmra.mxu0 %v1854_v48 }
  0xb1   : > { %608 = vmatprep.mubr.bf16.mxu0 %v2173_v0 }
  0xb8   : > { %609 = vmatmul.mubr.bf16.gmra.mxu0 %v1855_v49 }
  0xb9   : > { %618 = vmatprep.mubr.bf16.mxu0 %v2173_v0  ;;  %v2392_v0 = vld [vmem:[#allocation8 + $0x20] sm:$0xff]  }
  0xba   : > { %1668 = vmatpush3.bf16.msra.mxu0 %v2392_v0 }
  0xbb   : > { %1669 = vmatprep.subr.bf16.mxu0 %v2394_v1 }
  0xbe   : > { %1670 = vmatpush3.bf16.msra.mxu0 %v2397_v2 }
  0xc0   : > { %619 = vmatmul.mubr.bf16.gmra.mxu0 %v1856_v50 }
 0x148   : > { %v550_v8 = vpop.f32.mrf.mxu0 }
 0x149   : > { %v551_v15 = vadd.f32 %v550_v8, %v2414_v10 }
 0x14a   : > { %v552_v11 = vpop.f32.mrf.mxu0 }
 0x14b   : > { %v553_v13 = vadd.f32 %v552_v11, %v2410_v9  ;;  %v629_v22 = vmax.f32 %v551_v15, 0.0 }
 0x14c   : > { %v554_v12 = vpop.f32.mrf.mxu0 }
 0x14d   : > { %v555_v14 = vadd.f32 %v554_v12, %v2414_v10  ;;  %v630_v20 = vmax.f32 %v553_v13, 0.0 }
 0x14e   : > { %v556_v16 = vpop.f32.mrf.mxu0 }
 0x14f   : > { %v557_v17 = vadd.f32 %v556_v16, %v2410_v9  ;;  %v631_v18 = vmax.f32 %v555_v14, 0.0 }
 0x150   : > { %v560_v19 = vpop.f32.mrf.mxu0 }
 0x151   : > { %v632_v21 = vmax.f32 %v557_v17, 0.0  ;;  %v661_v25 = vpack.c.bf16 %v631_v18, %v629_v22  ;;  %v561_v29 = vadd.f32 %v560_v19, %v2414_v10 }
 0x152   : > { %v562_v23 = vpop.f32.mrf.mxu0 }
 0x153   : > { %v662_v24 = vpack.c.bf16 %v632_v21, %v630_v20  ;;  %v563_v27 = vadd.f32 %v562_v23, %v2410_v9  ;;  %v633_v36 = vmax.f32 %v561_v29, 0.0 }
 0x154   : > { %v564_v26 = vpop.f32.mrf.mxu0 }
 0x155   : > { %v565_v28 = vadd.f32 %v564_v26, %v2414_v10  ;;  %913 = vmatprep.mubr.bf16.mxu1 %v662_v24  ;;  %v634_v34 = vmax.f32 %v563_v27, 0.0 }
 0x156   : > { %v566_v30 = vpop.f32.mrf.mxu0  ;;  %914 = vmatmul.mubr.bf16.vlgmr.msra.gmra.mxu1 %v661_v25 }
 0x157   : > { %v567_v31 = vadd.f32 %v566_v30, %v2410_v9  ;;  %1733 = vmatpush3.bf16.msra.mxu1 %v1906_v58  ;;  %v635_v32 = vmax.f32 %v565_v28, 0.0 }
 0x158   : > { %v570_v33 = vpop.f32.mrf.mxu0  ;;  %1726 = vmatprep.subr.bf16.mxu1 %v1907_v59 }
 0x159   : > { %v636_v35 = vmax.f32 %v567_v31, 0.0  ;;  %v663_v39 = vpack.c.bf16 %v635_v32, %v633_v36  ;;  %v571_v43 = vadd.f32 %v570_v33, %v2414_v10 }
 0x15a   : > { %v572_v37 = vpop.f32.mrf.mxu0 }
 0x15b   : > { %v664_v38 = vpack.c.bf16 %v636_v35, %v634_v34  ;;  %1734 = vmatpush3.bf16.msra.mxu1 %v1908_v60  ;;  %v573_v41 = vadd.f32 %v572_v37, %v2410_v9  ;;  %v637_v50 = vmax.f32 %v571_v43, 0.0 }
 0x15c   : > { %v574_v40 = vpop.f32.mrf.mxu0  ;;  %1727 = vmatprep.subr.bf16.mxu1 %v1909_v61 }
 0x15d   : > { %v575_v42 = vadd.f32 %v574_v40, %v2414_v10  ;;  %923 = vmatprep.mubr.bf16.mxu1 %v664_v38  ;;  %v638_v48 = vmax.f32 %v573_v41, 0.0 }
 0x15e   : > { %v576_v44 = vpop.f32.mrf.mxu0  ;;  %924 = vmatmul.mubr.bf16.gmra.mxu1 %v663_v39 }
 0x15f   : > { %v577_v45 = vadd.f32 %v576_v44, %v2410_v9  ;;  %1735 = vmatpush3.bf16.msra.mxu1 %v1910_v62  ;;  %v639_v46 = vmax.f32 %v575_v42, 0.0 }
 0x160   : > { %v580_v47 = vpop.f32.mrf.mxu0  ;;  %1728 = vmatprep.subr.bf16.mxu1 %v1911_v63 }
 0x161   : > { %v640_v49 = vmax.f32 %v577_v45, 0.0  ;;  %v665_v53 = vpack.c.bf16 %v639_v46, %v637_v50  ;;  %v581_v57 = vadd.f32 %v580_v47, %v2414_v10 }
 0x162   : > { %v582_v51 = vpop.f32.mrf.mxu0 }
 0x163   : > { %v666_v52 = vpack.c.bf16 %v640_v49, %v638_v48  ;;  %1736 = vmatpush3.bf16.msra.mxu1 %v2392_v0  ;;  %v583_v55 = vadd.f32 %v582_v51, %v2410_v9  ;;  %v641_v0 = vmax.f32 %v581_v57, 0.0 }
 0x164   : > { %v584_v54 = vpop.f32.mrf.mxu0  ;;  %1729 = vmatprep.subr.bf16.mxu1 %v2394_v1 }
 0x165   : > { %v585_v56 = vadd.f32 %v584_v54, %v2414_v10  ;;  %933 = vmatprep.mubr.bf16.mxu1 %v666_v52  ;;  %v642_v62 = vmax.f32 %v583_v55, 0.0 }
 0x166   : > { %v586_v58 = vpop.f32.mrf.mxu0  ;;  %934 = vmatmul.mubr.bf16.gmra.mxu1 %v665_v53 }
 0x167   : > { %v587_v59 = vadd.f32 %v586_v58, %v2410_v9  ;;  %1737 = vmatpush3.bf16.msra.mxu1 %v2397_v2  ;;  %v643_v60 = vmax.f32 %v585_v56, 0.0 }
 0x168   : > { %v590_v61 = vpop.f32.mrf.mxu0 }
 0x169   : > { %v644_v63 = vmax.f32 %v587_v59, 0.0  ;;  %v667_v7 = vpack.c.bf16 %v643_v60, %v641_v0  ;;  %v591_v13 = vadd.f32 %v590_v61, %v2414_v10  ;;  %v1916_v0 = vld [vmem:[#allocation8 + $0x10] sm:$0xff]  }
 0x16a   : > { %v592_v3 = vpop.f32.mrf.mxu0 }
 0x16b   : > { %v668_v1 = vpack.c.bf16 %v644_v63, %v642_v62  ;;  %v593_v11 = vadd.f32 %v592_v3, %v2410_v9  ;;  %v645_v19 = vmax.f32 %v591_v13, 0.0  ;;  %v1915_v63 = vld [vmem:[#allocation8 + $0x50] sm:$0xff]   ;;  %v1917_v3 = vld [vmem:[#allocation8 + $0x48] sm:$0xff]  }
 0x16c   : > { %v594_v8 = vpop.f32.mrf.mxu0  ;;  %1671 = vmatprep.subr.bf16.mxu0 %v1915_v63  ;;  %1730 = vmatprep.subr.bf16.mxu1 %v1915_v63 }
 0x16d   : > { %v595_v12 = vadd.f32 %v594_v8, %v2414_v10  ;;  %943 = vmatprep.mubr.bf16.mxu1 %v668_v1  ;;  %v646_v17 = vmax.f32 %v593_v11, 0.0  ;;  %1672 = vmatpush3.bf16.msra.mxu0 %v1916_v0  ;;  %v1920_v1 = vld [vmem:[#allocation8] sm:$0xff]  }
 0x16e   : > { %v596_v14 = vpop.f32.mrf.mxu0  ;;  %944 = vmatmul.mubr.bf16.gmra.mxu1 %v667_v7  ;;  %1673 = vmatprep.subr.bf16.mxu0 %v1917_v3  ;;  %v709_v7 = vld [vmem:[%s2672_s4] sm:$0x3] }
 0x16f   : > { %v597_v2 = vadd.f32 %v596_v14, %v2410_v9  ;;  %v647_v15 = vmax.f32 %v595_v12, 0.0  ;;  %1738 = vmatpush3.bf16.msra.mxu1 %v1916_v0  ;;  %v2456_v11 = vrot.slane %v709_v7, %v384_v5  ;;  %v2460_v12 = vrot.slane %v709_v7, %v380_v6 }
 0x170   : > { %v600_v16 = vpop.f32.mrf.mxu0  ;;  %1731 = vmatprep.subr.bf16.mxu1 %v1917_v3 }
 0x171   : > { %v648_v18 = vmax.f32 %v597_v2, 0.0  ;;  %v669_v22 = vpack.c.bf16 %v647_v15, %v645_v19  ;;  %v601_v26 = vadd.f32 %v600_v16, %v2414_v10 }
 0x172   : > { %v602_v20 = vpop.f32.mrf.mxu0 }
 0x173   : > { %v670_v21 = vpack.c.bf16 %v648_v18, %v646_v17  ;;  %v603_v24 = vadd.f32 %v602_v20, %v2410_v9  ;;  %v649_v33 = vmax.f32 %v601_v26, 0.0 }
 0x174   : > { %v604_v23 = vpop.f32.mrf.mxu0 }
 0x175   : > { %v605_v25 = vadd.f32 %v604_v23, %v2414_v10  ;;  %953 = vmatprep.mubr.bf16.mxu1 %v670_v21  ;;  %v650_v31 = vmax.f32 %v603_v24, 0.0 }
 0x176   : > { %v606_v27 = vpop.f32.mrf.mxu0  ;;  %954 = vmatmul.mubr.bf16.gmra.mxu1 %v669_v22 }
 0x177   : > { %v607_v28 = vadd.f32 %v606_v27, %v2410_v9  ;;  %v651_v29 = vmax.f32 %v605_v25, 0.0 }
 0x178   : > { %v610_v30 = vpop.f32.mrf.mxu0 }
 0x179   : > { %v652_v32 = vmax.f32 %v607_v28, 0.0  ;;  %v671_v36 = vpack.c.bf16 %v651_v29, %v649_v33  ;;  %v611_v40 = vadd.f32 %v610_v30, %v2414_v10 }
 0x17a   : > { %v612_v34 = vpop.f32.mrf.mxu0 }
 0x17b   : > { %v672_v35 = vpack.c.bf16 %v652_v32, %v650_v31  ;;  %v613_v38 = vadd.f32 %v612_v34, %v2410_v9  ;;  %v653_v47 = vmax.f32 %v611_v40, 0.0 }
 0x17c   : > { %v614_v37 = vpop.f32.mrf.mxu0 }
 0x17d   : > { %v615_v39 = vadd.f32 %v614_v37, %v2414_v10  ;;  %963 = vmatprep.mubr.bf16.mxu1 %v672_v35  ;;  %v654_v45 = vmax.f32 %v613_v38, 0.0 }
 0x17e   : > { %v616_v41 = vpop.f32.mrf.mxu0  ;;  %964 = vmatmul.mubr.bf16.gmra.mxu1 %v671_v36 }
 0x17f   : > { %v617_v42 = vadd.f32 %v616_v41, %v2410_v9  ;;  %v655_v43 = vmax.f32 %v615_v39, 0.0 }
 0x180   : > { %v620_v44 = vpop.f32.mrf.mxu0 }
 0x181   : > { %v656_v46 = vmax.f32 %v617_v42, 0.0  ;;  %v673_v50 = vpack.c.bf16 %v655_v43, %v653_v47  ;;  %v621_v54 = vadd.f32 %v620_v44, %v2414_v10 }
 0x182   : > { %v622_v48 = vpop.f32.mrf.mxu0 }
 0x183   : > { %v674_v49 = vpack.c.bf16 %v656_v46, %v654_v45  ;;  %v623_v52 = vadd.f32 %v622_v48, %v2410_v9  ;;  %v657_v60 = vmax.f32 %v621_v54, 0.0 }
 0x184   : > { %v624_v51 = vpop.f32.mrf.mxu0 }
 0x185   : > { %v625_v53 = vadd.f32 %v624_v51, %v2414_v10  ;;  %973 = vmatprep.mubr.bf16.mxu1 %v674_v49  ;;  %v658_v58 = vmax.f32 %v623_v52, 0.0  ;;  %v1918_v10 = vld [vmem:[#allocation8 + $0x8] sm:$0xff]  }
 0x186   : > { %v626_v55 = vpop.f32.mrf.mxu0  ;;  %974 = vmatmul.mubr.bf16.gmra.mxu1 %v673_v50  ;;  %1674 = vmatpush3.bf16.msra.mxu0 %v1918_v10 }
 0x187   : > { %v627_v56 = vadd.f32 %v626_v55, %v2410_v9  ;;  %v659_v57 = vmax.f32 %v625_v53, 0.0  ;;  %1739 = vmatpush3.bf16.msra.mxu1 %v1918_v10  ;;  %v1919_v9 = vld [vmem:[#allocation8 + $0x40] sm:$0xff]  }
 0x188   : > { %1675 = vmatprep.subr.bf16.mxu0 %v1919_v9  ;;  %1732 = vmatprep.subr.bf16.mxu1 %v1919_v9 }
 0x189   : > { %v660_v59 = vmax.f32 %v627_v56, 0.0  ;;  %v675_v62 = vpack.c.bf16 %v659_v57, %v657_v60 }
 0x18a   : > { %1676 = vmatpush3.bf16.msra.mxu0 %v1920_v1 }
 0x18b   : > { %v676_v61 = vpack.c.bf16 %v660_v59, %v658_v58  ;;  %1740 = vmatpush3.bf16.msra.mxu1 %v1920_v1 }
 0x18d   : > { %983 = vmatprep.mubr.bf16.mxu1 %v676_v61 }
 0x18e   : > { %984 = vmatmul.mubr.bf16.gmra.mxu1 %v675_v62 }
 0x216   : > { %v915_v8 = vpop.f32.mrf.mxu1 }
 0x217   : > { %v916_v16 = vadd.f32 %v915_v8, %v2460_v12 }
 0x218   : > { %v917_v13 = vpop.f32.mrf.mxu1 }
 0x219   : > { %v918_v2 = vadd.f32 %v917_v13, %v2456_v11  ;;  %v994_v22 = vmax.f32 %v916_v16, 0.0 }
 0x21a   : > { %v919_v14 = vpop.f32.mrf.mxu1 }
 0x21b   : > { %v920_v15 = vadd.f32 %v919_v14, %v2460_v12  ;;  %v995_v21 = vmax.f32 %v918_v2, 0.0 }
 0x21c   : > { %v921_v17 = vpop.f32.mrf.mxu1 }
 0x21d   : > { %v922_v18 = vadd.f32 %v921_v17, %v2456_v11  ;;  %v996_v19 = vmax.f32 %v920_v15, 0.0 }
 0x21e   : > { %v925_v20 = vpop.f32.mrf.mxu1 }
 0x21f   : > { %v997_v5 = vmax.f32 %v922_v18, 0.0  ;;  %v1026_v6 = vpack.c.bf16 %v996_v19, %v994_v22  ;;  %v926_v27 = vadd.f32 %v925_v20, %v2460_v12 }
 0x220   : > { %v927_v23 = vpop.f32.mrf.mxu1 }
 0x221   : > { %v1027_v4 = vpack.c.bf16 %v997_v5, %v995_v21  ;;  %v928_v25 = vadd.f32 %v927_v23, %v2456_v11  ;;  %v998_v34 = vmax.f32 %v926_v27, 0.0 }
 0x222   : > { %v929_v24 = vpop.f32.mrf.mxu1 }
 0x223   : > { %v930_v26 = vadd.f32 %v929_v24, %v2460_v12  ;;  %1209 = vmatprep.mubr.bf16.mxu0 %v1027_v4  ;;  %v999_v32 = vmax.f32 %v928_v25, 0.0 }
 0x224   : > { %v931_v28 = vpop.f32.mrf.mxu1  ;;  %1210 = vmatmul.mubr.bf16.vlgmr.msra.gmra.mxu0 %v1026_v6 }
 0x225   : > { %v932_v29 = vadd.f32 %v931_v28, %v2456_v11  ;;  %v1000_v30 = vmax.f32 %v930_v26, 0.0 }
 0x226   : > { %v935_v31 = vpop.f32.mrf.mxu1 }
 0x227   : > { %v1001_v33 = vmax.f32 %v932_v29, 0.0  ;;  %v1028_v37 = vpack.c.bf16 %v1000_v30, %v998_v34  ;;  %v936_v41 = vadd.f32 %v935_v31, %v2460_v12 }
 0x228   : > { %v937_v35 = vpop.f32.mrf.mxu1 }
 0x229   : > { %v1029_v36 = vpack.c.bf16 %v1001_v33, %v999_v32  ;;  %v938_v39 = vadd.f32 %v937_v35, %v2456_v11  ;;  %v1002_v48 = vmax.f32 %v936_v41, 0.0 }
 0x22a   : > { %v939_v38 = vpop.f32.mrf.mxu1 }
 0x22b   : > { %v940_v40 = vadd.f32 %v939_v38, %v2460_v12  ;;  %1217 = vmatprep.mubr.bf16.mxu0 %v1029_v36  ;;  %v1003_v46 = vmax.f32 %v938_v39, 0.0 }
 0x22c   : > { %v941_v42 = vpop.f32.mrf.mxu1  ;;  %1218 = vmatmul.mubr.bf16.gmra.mxu0 %v1028_v37 }
 0x22d   : > { %v942_v43 = vadd.f32 %v941_v42, %v2456_v11  ;;  %v1004_v44 = vmax.f32 %v940_v40, 0.0 }
 0x22e   : > { %v945_v45 = vpop.f32.mrf.mxu1 }
 0x22f   : > { %v1005_v47 = vmax.f32 %v942_v43, 0.0  ;;  %v1030_v51 = vpack.c.bf16 %v1004_v44, %v1002_v48  ;;  %v946_v55 = vadd.f32 %v945_v45, %v2460_v12 }
 0x230   : > { %v947_v49 = vpop.f32.mrf.mxu1 }
 0x231   : > { %v1031_v50 = vpack.c.bf16 %v1005_v47, %v1003_v46  ;;  %v948_v53 = vadd.f32 %v947_v49, %v2456_v11  ;;  %v1006_v62 = vmax.f32 %v946_v55, 0.0 }
 0x232   : > { %v949_v52 = vpop.f32.mrf.mxu1 }
 0x233   : > { %v950_v54 = vadd.f32 %v949_v52, %v2460_v12  ;;  %1225 = vmatprep.mubr.bf16.mxu0 %v1031_v50  ;;  %v1007_v60 = vmax.f32 %v948_v53, 0.0 }
 0x234   : > { %v951_v56 = vpop.f32.mrf.mxu1  ;;  %1226 = vmatmul.mubr.bf16.gmra.mxu0 %v1030_v51 }
 0x235   : > { %v952_v57 = vadd.f32 %v951_v56, %v2456_v11  ;;  %v1008_v58 = vmax.f32 %v950_v54, 0.0 }
 0x236   : > { %v955_v59 = vpop.f32.mrf.mxu1 }
 0x237   : > { %v1009_v61 = vmax.f32 %v952_v57, 0.0  ;;  %v1032_v3 = vpack.c.bf16 %v1008_v58, %v1006_v62  ;;  %v956_v7 = vadd.f32 %v955_v59, %v2460_v12  ;;  %v2497_v59 = vld [vmem:[%s2674_s6] ss:$0 sm:$0xff] }
 0x238   : > { %v957_v63 = vpop.f32.mrf.mxu1 }
 0x239   : > { %v1033_v0 = vpack.c.bf16 %v1009_v61, %v1007_v60  ;;  %v958_v9 = vadd.f32 %v957_v63, %v2456_v11  ;;  %v1010_v17 = vmax.f32 %v956_v7, 0.0 }
 0x23a   : > { %v959_v10 = vpop.f32.mrf.mxu1 }
 0x23b   : > { %v960_v1 = vadd.f32 %v959_v10, %v2460_v12  ;;  %1233 = vmatprep.mubr.bf16.mxu0 %v1033_v0  ;;  %v1011_v15 = vmax.f32 %v958_v9, 0.0 }
 0x23c   : > { %v961_v8 = vpop.f32.mrf.mxu1  ;;  %1234 = vmatmul.mubr.bf16.gmra.mxu0 %v1032_v3 }
 0x23d   : > { %v962_v13 = vadd.f32 %v961_v8, %v2456_v11  ;;  %v1012_v14 = vmax.f32 %v960_v1, 0.0 }
 0x23e   : > { %v965_v2 = vpop.f32.mrf.mxu1 }
 0x23f   : > { %v1013_v16 = vmax.f32 %v962_v13, 0.0  ;;  %v1034_v20 = vpack.c.bf16 %v1012_v14, %v1010_v17  ;;  %v966_v23 = vadd.f32 %v965_v2, %v2460_v12 }
 0x240   : > { %v967_v18 = vpop.f32.mrf.mxu1 }
 0x241   : > { %v1035_v19 = vpack.c.bf16 %v1013_v16, %v1011_v15  ;;  %v968_v5 = vadd.f32 %v967_v18, %v2456_v11  ;;  %v1014_v28 = vmax.f32 %v966_v23, 0.0 }
 0x242   : > { %v969_v21 = vpop.f32.mrf.mxu1 }
 0x243   : > { %v970_v22 = vadd.f32 %v969_v21, %v2460_v12  ;;  %1241 = vmatprep.mubr.bf16.mxu0 %v1035_v19  ;;  %v1015_v26 = vmax.f32 %v968_v5, 0.0 }
 0x244   : > { %v971_v4 = vpop.f32.mrf.mxu1  ;;  %1242 = vmatmul.mubr.bf16.gmra.mxu0 %v1034_v20 }
 0x245   : > { %v972_v6 = vadd.f32 %v971_v4, %v2456_v11  ;;  %v1016_v24 = vmax.f32 %v970_v22, 0.0 }
 0x246   : > { %v975_v25 = vpop.f32.mrf.mxu1 }
 0x247   : > { %v1017_v27 = vmax.f32 %v972_v6, 0.0  ;;  %v1036_v31 = vpack.c.bf16 %v1016_v24, %v1014_v28  ;;  %v976_v35 = vadd.f32 %v975_v25, %v2460_v12 }
 0x248   : > { %v977_v29 = vpop.f32.mrf.mxu1 }
 0x249   : > { %v1037_v30 = vpack.c.bf16 %v1017_v27, %v1015_v26  ;;  %v978_v33 = vadd.f32 %v977_v29, %v2456_v11  ;;  %v1018_v42 = vmax.f32 %v976_v35, 0.0 }
 0x24a   : > { %v979_v32 = vpop.f32.mrf.mxu1 }
 0x24b   : > { %v980_v34 = vadd.f32 %v979_v32, %v2460_v12  ;;  %1249 = vmatprep.mubr.bf16.mxu0 %v1037_v30  ;;  %v1019_v40 = vmax.f32 %v978_v33, 0.0 }
 0x24c   : > { %v981_v36 = vpop.f32.mrf.mxu1  ;;  %1250 = vmatmul.mubr.bf16.gmra.mxu0 %v1036_v31 }
 0x24d   : > { %v982_v37 = vadd.f32 %v981_v36, %v2456_v11  ;;  %v1020_v38 = vmax.f32 %v980_v34, 0.0 }
 0x24e   : > { %v985_v39 = vpop.f32.mrf.mxu1 }
 0x24f   : > { %v1021_v41 = vmax.f32 %v982_v37, 0.0  ;;  %v1038_v45 = vpack.c.bf16 %v1020_v38, %v1018_v42  ;;  %v986_v49 = vadd.f32 %v985_v39, %v2460_v12 }
 0x250   : > { %v987_v43 = vpop.f32.mrf.mxu1 }
 0x251   : > { %v1039_v44 = vpack.c.bf16 %v1021_v41, %v1019_v40  ;;  %v988_v47 = vadd.f32 %v987_v43, %v2456_v11  ;;  %v1022_v55 = vmax.f32 %v986_v49, 0.0 }
 0x252   : > { %v989_v46 = vpop.f32.mrf.mxu1 }
 0x253   : > { %v990_v48 = vadd.f32 %v989_v46, %v2460_v12  ;;  %1257 = vmatprep.mubr.bf16.mxu1 %v1039_v44  ;;  %v1023_v53 = vmax.f32 %v988_v47, 0.0 }
 0x254   : > { %v991_v50 = vpop.f32.mrf.mxu1  ;;  %1258 = vmatmul.mubr.bf16.vlgmr.msra.gmra.mxu1 %v1038_v45 }
 0x255   : > { %v992_v51 = vadd.f32 %v991_v50, %v2456_v11  ;;  %v1024_v52 = vmax.f32 %v990_v48, 0.0 }
 0x257   : > { %v1025_v54 = vmax.f32 %v992_v51, 0.0  ;;  %v1040_v57 = vpack.c.bf16 %v1024_v52, %v1022_v55 }
 0x259   : > { %v1041_v56 = vpack.c.bf16 %v1025_v54, %v1023_v53 }
 0x25b   : > { %1265 = vmatprep.mubr.bf16.mxu1 %v1041_v56 }
 0x25c   : > { %1266 = vmatmul.mubr.bf16.gmra.mxu1 %v1040_v57 }
 0x2e4   : > { %v1677_v58 = vpop.f32.mrf.mxu0 }
 0x2e6   : > { %v1678_v60 = vpop.f32.mrf.mxu0 }
 0x2e7   : > { %v1679_v12 = vadd.f32 %v1678_v60, %v1677_v58 }
 0x2e8   : > { %v1680_v61 = vpop.f32.mrf.mxu0 }
 0x2e9   : > { %v2500_v62 = vadd.f32 %v1679_v12, %v2497_v59 }
 0x2ea   : > { %v1681_v11 = vpop.f32.mrf.mxu0 }
 0x2eb   : > { %v1274_v63 = vand.u32 2147483647, %v2500_v62  ;;  %v1682_v0 = vadd.f32 %v1681_v11, %v1680_v61  ;;  %vm1370_vm0 = vcmp.ge.f32.partialorder %v2500_v62, 0.0 }
 0x2ec   : > { %v1683_v3 = vpop.f32.mrf.mxu0 }
 0x2ed   : > { %v1290_v10 = vsub.f32 0.0, %v1274_v63  ;;  %v2504_v9 = vadd.f32 %v1682_v0, %v2497_v59 }
 0x2ee   : > { %v1684_v1 = vpop.f32.mrf.mxu0 }
 0x2ef   : > { %v1306_v7 = vmul.f32 1.442695, %v1290_v10  ;;  %v1275_v8 = vand.u32 2147483647, %v2504_v9  ;;  %v1685_v13 = vadd.f32 %v1684_v1, %v1683_v3  ;;  %vm1371_vm1 = vcmp.ge.f32.partialorder %v2504_v9, 0.0 }
 0x2f0   : > { %v1686_v14 = vpop.f32.mrf.mxu0 }
 0x2f1   : > { %1921 = vpow2.f32 %v1306_v7  ;;  %v1291_v2 = vsub.f32 0.0, %v1275_v8  ;;  %v2508_v15 = vadd.f32 %v1685_v13, %v2497_v59 }
 0x2f2   : > { %v1687_v16 = vpop.f32.mrf.mxu0 }
 0x2f3   : > { %v1308_v17 = vmul.f32 1.442695, %v1291_v2  ;;  %v1276_v18 = vand.u32 2147483647, %v2508_v15  ;;  %v1688_v19 = vadd.f32 %v1687_v16, %v1686_v14  ;;  %vm1372_vm2 = vcmp.ge.f32.partialorder %v2508_v15, 0.0 }
 0x2f4   : > { %v1689_v20 = vpop.f32.mrf.mxu0 }
 0x2f5   : > { %1923 = vpow2.f32 %v1308_v17  ;;  %v1292_v21 = vsub.f32 0.0, %v1276_v18  ;;  %v2512_v5 = vadd.f32 %v1688_v19, %v2497_v59 }
 0x2f6   : > { %v1690_v22 = vpop.f32.mrf.mxu0 }
 0x2f7   : > { %v1310_v23 = vmul.f32 1.442695, %v1292_v21  ;;  %v1277_v4 = vand.u32 2147483647, %v2512_v5  ;;  %v1691_v6 = vadd.f32 %v1690_v22, %v1689_v20  ;;  %vm1373_vm3 = vcmp.ge.f32.partialorder %v2512_v5, 0.0 }
 0x2f8   : > { %v1692_v24 = vpop.f32.mrf.mxu0 }
 0x2f9   : > { %1925 = vpow2.f32 %v1310_v23  ;;  %v1293_v25 = vsub.f32 0.0, %v1277_v4  ;;  %v2516_v26 = vadd.f32 %v1691_v6, %v2497_v59 }
 0x2fa   : > { %v1693_v27 = vpop.f32.mrf.mxu0 }
 0x2fb   : > { %v1312_v28 = vmul.f32 1.442695, %v1293_v25  ;;  %v1278_v29 = vand.u32 2147483647, %v2516_v26  ;;  %v1694_v30 = vadd.f32 %v1693_v27, %v1692_v24  ;;  %vm1374_vm4 = vcmp.ge.f32.partialorder %v2516_v26, 0.0 }
 0x2fc   : > { %v1695_v31 = vpop.f32.mrf.mxu0 }
 0x2fd   : > { %1927 = vpow2.f32 %v1312_v28  ;;  %v1294_v32 = vsub.f32 0.0, %v1278_v29  ;;  %v2520_v33 = vadd.f32 %v1694_v30, %v2497_v59 }
 0x2fe   : > { %v1922_v34 = vpop.eup %1921  ;;  %v1696_v35 = vpop.f32.mrf.mxu0 }
 0x2ff   : > { %v1338_v36 = vadd.f32 1.0, %v1922_v34  ;;  %v1314_v37 = vmul.f32 1.442695, %v1294_v32  ;;  %v1279_v38 = vand.u32 2147483647, %v2520_v33  ;;  %v1697_v39 = vadd.f32 %v1696_v35, %v1695_v31 }
 0x300   : > { %v1698_v40 = vpop.f32.mrf.mxu0  ;;  %vm1375_vm5 = vcmp.ge.f32.partialorder %v2520_v33, 0.0 }
 0x301   : > { %1929 = vrcp.f32 %v1338_v36  ;;  %v1295_v41 = vsub.f32 0.0, %v1279_v38  ;;  %v2524_v43 = vadd.f32 %v1697_v39, %v2497_v59 }
 0x302   : > { %v1924_v42 = vpop.eup %1923  ;;  %1931 = vpow2.f32 %v1314_v37  ;;  %v1699_v44 = vpop.f32.mrf.mxu0 }
 0x303   : > { %v1339_v45 = vadd.f32 1.0, %v1924_v42  ;;  %v1316_v46 = vmul.f32 1.442695, %v1295_v41  ;;  %v1700_v47 = vadd.f32 %v1699_v44, %v1698_v40  ;;  %v1280_v48 = vand.u32 2147483647, %v2524_v43 }
 0x304   : > { %v1701_v49 = vpop.f32.mrf.mxu0  ;;  %vm1376_vm6 = vcmp.ge.f32.partialorder %v2524_v43, 0.0 }
 0x305   : > { %1933 = vrcp.f32 %v1339_v45  ;;  %v2528_v50 = vadd.f32 %v1700_v47, %v2497_v59  ;;  %v1296_v52 = vsub.f32 0.0, %v1280_v48 }
 0x306   : > { %v1926_v51 = vpop.eup %1925  ;;  %1935 = vpow2.f32 %v1316_v46  ;;  %v1702_v53 = vpop.f32.mrf.mxu0 }
 0x307   : > { %v1340_v54 = vadd.f32 1.0, %v1926_v51  ;;  %v1281_v55 = vand.u32 2147483647, %v2528_v50  ;;  %v1703_v56 = vadd.f32 %v1702_v53, %v1701_v49  ;;  %v1318_v57 = vmul.f32 1.442695, %v1296_v52 }
 0x308   : > { %v1704_v58 = vpop.f32.mrf.mxu0  ;;  %vm1377_vm7 = vcmp.ge.f32.partialorder %v2528_v50, 0.0 }
 0x309   : > { %1937 = vrcp.f32 %v1340_v54  ;;  %v1297_v60 = vsub.f32 0.0, %v1281_v55  ;;  %v2532_v12 = vadd.f32 %v1703_v56, %v2497_v59 }
 0x30a   : > { %v2534_v61 = vpop.eup %1927  ;;  %1939 = vpow2.f32 %v1318_v57  ;;  %v1705_v11 = vpop.f32.mrf.mxu0 }
 0x30b   : > { %v1341_v63 = vadd.f32 1.0, %v2534_v61  ;;  %v1320_v0 = vmul.f32 1.442695, %v1297_v60  ;;  %v1282_v3 = vand.u32 2147483647, %v2532_v12  ;;  %v1706_v10 = vadd.f32 %v1705_v11, %v1704_v58 }
 0x30c   : > { %v1707_v1 = vpop.f32.mrf.mxu0  ;;  %vm1378_vm8 = vcmp.ge.f32.partialorder %v2532_v12, 0.0 }
 0x30d   : > { %1941 = vrcp.f32 %v1341_v63  ;;  %v1298_v7 = vsub.f32 0.0, %v1282_v3  ;;  %v2540_v13 = vadd.f32 %v1706_v10, %v2497_v59 }
 0x30e   : > { %v1930_v8 = vpop.eup %1929  ;;  %1943 = vpow2.f32 %v1320_v0  ;;  %v1708_v14 = vpop.f32.mrf.mxu0 }
 0x30f   : > { %v2542_v2 = vpop.eup %1931  ;;  %v1386_v16 = vmul.f32 %v1930_v8, %v1922_v34  ;;  %v1322_v17 = vmul.f32 1.442695, %v1298_v7  ;;  %v1709_v18 = vadd.f32 %v1708_v14, %v1707_v1  ;;  %v1283_v20 = vand.u32 2147483647, %v2540_v13 }
 0x310   : > { %v1342_v19 = vadd.f32 1.0, %v2542_v2  ;;  %v1710_v21 = vpop.f32.mrf.mxu0  ;;  %vm1379_vm9 = vcmp.ge.f32.partialorder %v2540_v13, 0.0 }
 0x311   : > { %v1402_v22 = vsel %vm1370_vm0, %v1930_v8, %v1386_v16  ;;  %1945 = vpow2.f32 %v1322_v17  ;;  %v2548_v23 = vadd.f32 %v1709_v18, %v2497_v59  ;;  %v1299_v24 = vsub.f32 0.0, %v1283_v20 }
 0x312   : > { %v1934_v4 = vpop.eup %1933  ;;  %v1418_v6 = vmin.f32 %v1402_v22, 1.0  ;;  %1947 = vrcp.f32 %v1342_v19  ;;  %v1711_v25 = vpop.f32.mrf.mxu0 }
 0x313   : > { %v2550_v27 = vpop.eup %1935  ;;  %v1387_v28 = vmul.f32 %v1934_v4, %v1924_v42  ;;  %v1284_v62 = vand.u32 2147483647, %v2548_v23  ;;  %v1712_v29 = vadd.f32 %v1711_v25, %v1710_v21  ;;  %v1324_v31 = vmul.f32 1.442695, %v1299_v24 }
 0x314   : > { %1434 = vst [vmem:[%s2553_s21] sm:$0xff] %v1418_v6  ;;  %v1343_v30 = vadd.f32 1.0, %v2550_v27  ;;  %v1713_v32 = vpop.f32.mrf.mxu1  ;;  %vm1380_vm10 = vcmp.ge.f32.partialorder %v2548_v23, 0.0 }
 0x315   : > { %v1403_v34 = vsel %vm1371_vm1, %v1934_v4, %v1387_v28  ;;  %v1300_v35 = vsub.f32 0.0, %v1284_v62  ;;  %v2559_v36 = vadd.f32 %v1712_v29, %v2497_v59 }
 0x316   : > { %v1938_v37 = vpop.eup %1937  ;;  %v1419_v38 = vmin.f32 %v1403_v34, 1.0  ;;  %1949 = vrcp.f32 %v1343_v30  ;;  %v1714_v39 = vpop.f32.mrf.mxu1 }
 0x317   : > { %v2561_v40 = vpop.eup %1939  ;;  %v1388_v41 = vmul.f32 %v1938_v37, %v1926_v51  ;;  %1951 = vpow2.f32 %v1324_v31  ;;  %v1326_v42 = vmul.f32 1.442695, %v1300_v35  ;;  %v1285_v9 = vand.u32 2147483647, %v2559_v36 }
 0x318   : > { %1435 = vst [vmem:[%s2553_s21 + $0x8] sm:$0xff] %v1419_v38  ;;  %v1344_v44 = vadd.f32 1.0, %v2561_v40  ;;  %v1715_v45 = vadd.f32 %v1714_v39, %v1713_v32  ;;  %v1716_v46 = vpop.f32.mrf.mxu1  ;;  %vm1381_vm11 = vcmp.ge.f32.partialorder %v2559_v36, 0.0 }
 0x319   : > { %v1404_v47 = vsel %vm1372_vm2, %v1938_v37, %v1388_v41  ;;  %1953 = vpow2.f32 %v1326_v42  ;;  %v1301_v48 = vsub.f32 0.0, %v1285_v9 }
 0x31a   : > { %v1942_v49 = vpop.eup %1941  ;;  %v1420_v52 = vmin.f32 %v1404_v47, 1.0  ;;  %1955 = vrcp.f32 %v1344_v44  ;;  %v2568_v51 = vadd.f32 %v1715_v45, %v2497_v59  ;;  %v1717_v53 = vpop.f32.mrf.mxu1 }
 0x31b   : > { %v2570_v54 = vpop.eup %1943  ;;  %v1389_v55 = vmul.f32 %v1942_v49, %v2534_v61  ;;  %v1328_v15 = vmul.f32 1.442695, %v1301_v48  ;;  %v1718_v56 = vadd.f32 %v1717_v53, %v1716_v46 }
 0x31c   : > { %1436 = vst [vmem:[%s2553_s21 + $0x10] sm:$0xff] %v1420_v52  ;;  %v1345_v57 = vadd.f32 1.0, %v2570_v54  ;;  %v1286_v58 = vand.u32 2147483647, %v2568_v51  ;;  %v1719_v60 = vpop.f32.mrf.mxu1  ;;  %vm1382_vm12 = vcmp.ge.f32.partialorder %v2568_v51, 0.0 }
 0x31d   : > { %v1405_v11 = vsel %vm1373_vm3, %v1942_v49, %v1389_v55  ;;  %1957 = vpow2.f32 %v1328_v15  ;;  %v2578_v63 = vadd.f32 %v1718_v56, %v2497_v59 }
 0x31e   : > { %v1946_v0 = vpop.eup %1945  ;;  %v1421_v3 = vmin.f32 %v1405_v11, 1.0  ;;  %1959 = vrcp.f32 %v1345_v57  ;;  %v1302_v61 = vsub.f32 0.0, %v1286_v58  ;;  %v1720_v10 = vpop.f32.mrf.mxu1 }
 0x31f   : > { %v1948_v1 = vpop.eup %1947  ;;  %v1346_v7 = vadd.f32 1.0, %v1946_v0  ;;  %v1287_v5 = vand.u32 2147483647, %v2578_v63  ;;  %v1721_v8 = vadd.f32 %v1720_v10, %v1719_v60  ;;  %vm1383_vm13 = vcmp.ge.f32.partialorder %v2578_v63, 0.0 }
 0x320   : > { %1437 = vst [vmem:[%s2553_s21 + $0x18] sm:$0xff] %v1421_v3  ;;  %v1390_v14 = vmul.f32 %v1948_v1, %v2542_v2  ;;  %v1330_v16 = vmul.f32 1.442695, %v1302_v61  ;;  %v1722_v17 = vpop.f32.mrf.mxu1 }
 0x321   : > { %1961 = vrcp.f32 %v1346_v7  ;;  %v1303_v18 = vsub.f32 0.0, %v1287_v5  ;;  %v2585_v19 = vadd.f32 %v1721_v8, %v2497_v59 }
 0x322   : > { %v1406_v20 = vsel %vm1374_vm4, %v1948_v1, %v1390_v14  ;;  %1963 = vpow2.f32 %v1330_v16  ;;  %v1723_v21 = vpop.f32.mrf.mxu1 }
 0x323   : > { %v1950_v22 = vpop.eup %1949  ;;  %v1422_v4 = vmin.f32 %v1406_v20, 1.0  ;;  %v1332_v6 = vmul.f32 1.442695, %v1303_v18  ;;  %v1288_v24 = vand.u32 2147483647, %v2585_v19  ;;  %v1724_v28 = vadd.f32 %v1723_v21, %v1722_v17 }
 0x324   : > { %v1952_v25 = vpop.eup %1951  ;;  %v1391_v2 = vmul.f32 %v1950_v22, %v2550_v27  ;;  %vm1384_vm14 = vcmp.ge.f32.partialorder %v2585_v19, 0.0 }
 0x325   : > { %1438 = vst [vmem:[%s2553_s21 + $0x20] sm:$0xff] %v1422_v4  ;;  %v1347_v26 = vadd.f32 1.0, %v1952_v25  ;;  %1965 = vpow2.f32 %v1332_v6  ;;  %v1304_v62 = vsub.f32 0.0, %v1288_v24  ;;  %v2592_v31 = vadd.f32 %v1724_v28, %v2497_v59 }
 0x326   : > { %v1954_v29 = vpop.eup %1953  ;;  %v1407_v30 = vsel %vm1375_vm5, %v1950_v22, %v1391_v2 }
 0x327   : > { %v1956_v32 = vpop.eup %1955  ;;  %v1423_v34 = vmin.f32 %v1407_v30, 1.0  ;;  %1967 = vrcp.f32 %v1347_v26  ;;  %v1348_v35 = vadd.f32 1.0, %v1954_v29  ;;  %v1334_v37 = vmul.f32 1.442695, %v1304_v62 }
 0x328   : > { %v1392_v27 = vmul.f32 %v1956_v32, %v2561_v40  ;;  %v1289_v38 = vand.u32 2147483647, %v2592_v31  ;;  %vm1385_vm15 = vcmp.ge.f32.partialorder %v2592_v31, 0.0 }
 0x329   : > { %1439 = vst [vmem:[%s2553_s21 + $0x28] sm:$0xff] %v1423_v34  ;;  %1969 = vrcp.f32 %v1348_v35 }
 0x32a   : > { %v1958_v33 = vpop.eup %1957  ;;  %v1408_v39 = vsel %vm1376_vm6, %v1956_v32, %v1392_v27  ;;  %1971 = vpow2.f32 %v1334_v37  ;;  %v1305_v41 = vsub.f32 0.0, %v1289_v38 }
 0x32b   : > { %v1960_v59 = vpop.eup %1959  ;;  %v1424_v42 = vmin.f32 %v1408_v39, 1.0  ;;  %v1349_v9 = vadd.f32 1.0, %v1958_v33 }
 0x32c   : > { %v1393_v44 = vmul.f32 %v1960_v59, %v2570_v54  ;;  %v1336_v45 = vmul.f32 1.442695, %v1305_v41 }
 0x32d   : > { %1440 = vst [vmem:[%s2553_s21 + $0x30] sm:$0xff] %v1424_v42  ;;  %1973 = vrcp.f32 %v1349_v9 }
 0x32e   : > { %v1962_v40 = vpop.eup %1961  ;;  %v1409_v46 = vsel %vm1377_vm7, %v1960_v59, %v1393_v44  ;;  %1975 = vpow2.f32 %v1336_v45 }
 0x32f   : > { %v1964_v43 = vpop.eup %1963  ;;  %v1425_v47 = vmin.f32 %v1409_v46, 1.0  ;;  %v1394_v48 = vmul.f32 %v1962_v40, %v1946_v0 }
 0x330   : > { %v1350_v49 = vadd.f32 1.0, %v1964_v43 }
 0x331   : > { %1441 = vst [vmem:[%s2553_s21 + $0x38] sm:$0xff] %v1425_v47  ;;  %v1410_v52 = vsel %vm1378_vm8, %v1962_v40, %v1394_v48 }
 0x332   : > { %v1966_v53 = vpop.eup %1965  ;;  %v1426_v55 = vmin.f32 %v1410_v52, 1.0  ;;  %1977 = vrcp.f32 %v1350_v49 }
 0x333   : > { %v1351_v54 = vadd.f32 1.0, %v1966_v53 }
 0x334   : > { %v1968_v15 = vpop.eup %1967  ;;  %1442 = vst [vmem:[%s2553_s21 + $0x40] sm:$0xff] %v1426_v55 }
 0x335   : > { %v1395_v50 = vmul.f32 %v1968_v15, %v1952_v25  ;;  %1979 = vrcp.f32 %v1351_v54 }
 0x336   : > { %v1970_v56 = vpop.eup %1969 }
 0x337   : > { %v1972_v57 = vpop.eup %1971  ;;  %v1411_v58 = vsel %vm1379_vm9, %v1968_v15, %v1395_v50  ;;  %v1396_v60 = vmul.f32 %v1970_v56, %v1954_v29 }
 0x338   : > { %v1427_v12 = vmin.f32 %v1411_v58, 1.0  ;;  %v1352_v11 = vadd.f32 1.0, %v1972_v57 }
 0x339   : > { %v1412_v0 = vsel %vm1380_vm10, %v1970_v56, %v1396_v60 }
 0x33a   : > { %v1974_v3 = vpop.eup %1973  ;;  %1443 = vst [vmem:[%s2553_s21 + $0x48] sm:$0xff] %v1427_v12  ;;  %v1428_v61 = vmin.f32 %v1412_v0, 1.0  ;;  %1981 = vrcp.f32 %v1352_v11 }
 0x33b   : > { %v1976_v10 = vpop.eup %1975  ;;  %v1397_v1 = vmul.f32 %v1974_v3, %v1958_v33 }
 0x33c   : > { %1444 = vst [vmem:[%s2553_s21 + $0x50] sm:$0xff] %v1428_v61  ;;  %v1353_v13 = vadd.f32 1.0, %v1976_v10 }
 0x33d   : > { %v1413_v7 = vsel %vm1381_vm11, %v1974_v3, %v1397_v1 }
 0x33e   : > { %v1429_v5 = vmin.f32 %v1413_v7, 1.0  ;;  %1983 = vrcp.f32 %v1353_v13 }
 0x33f   : > { %v1978_v8 = vpop.eup %1977 }
 0x340   : > { %1445 = vst [vmem:[%s2553_s21 + $0x58] sm:$0xff] %v1429_v5  ;;  %v1398_v23 = vmul.f32 %v1978_v8, %v1964_v43 }
 0x342   : > { %v1980_v14 = vpop.eup %1979  ;;  %v1414_v16 = vsel %vm1382_vm12, %v1978_v8, %v1398_v23 }
 0x343   : > { %v1430_v17 = vmin.f32 %v1414_v16, 1.0  ;;  %v1399_v18 = vmul.f32 %v1980_v14, %v1966_v53 }
 0x345   : > { %1446 = vst [vmem:[%s2553_s21 + $0x60] sm:$0xff] %v1430_v17  ;;  %v1415_v36 = vsel %vm1383_vm13, %v1980_v14, %v1399_v18 }
 0x346   : > { %v1431_v20 = vmin.f32 %v1415_v36, 1.0 }
 0x347   : > { %v1982_v21 = vpop.eup %1981 }
 0x348   : > { %1447 = vst [vmem:[%s2553_s21 + $0x68] sm:$0xff] %v1431_v20  ;;  %v1400_v22 = vmul.f32 %v1982_v21, %v1972_v57 }
 0x34a   : > { %v1416_v51 = vsel %vm1384_vm14, %v1982_v21, %v1400_v22 }
 0x34b   : > { %v1984_v4 = vpop.eup %1983  ;;  %v1432_v6 = vmin.f32 %v1416_v51, 1.0 }
 0x34c   : > { %v1401_v24 = vmul.f32 %v1984_v4, %v1976_v10 }
 0x34d   : > { %1448 = vst [vmem:[%s2553_s21 + $0x70] sm:$0xff] %v1432_v6 }
 0x34e   : > { %v1417_v63 = vsel %vm1385_vm15, %v1984_v4, %v1401_v24 }
 0x34f   : > { %v1433_v19 = vmin.f32 %v1417_v63, 1.0 }
 0x351   : > { %1449 = vst [vmem:[%s2553_s21 + $0x78] sm:$0xff] %v1433_v19 }
 0x352   : > { %2104 = shalt.err (!%p2101_p9)
}
 0x353   : > { %s2105_s15 = scalar_lea.hbm %s2622_s16, 2048  ;;  %s2109_s14 = scalar_lea.hbm %s2675_s7, 4096 }
 0x354   : > { %p2106_p1 = scmp.ne.s32.totalorder %s2622_s16, %s2105_s15  ;;  %p2110_p11 = scmp.lt.s32.totalorder %s2622_s16, %s2675_s7 }
 0x355   : > { %p2111_p13 = scmp.lt.s32.totalorder %s2109_s14, %s2105_s15 }
 0x356   : > { %p2107_p8 = pnand %p2106_p1, %p2699_p6 }
 0x357   : > { %p2112_p2 = por %p2111_p13, %p2110_p11 }
 0x358   : > { %p2108_p10 = pneg %p2107_p8 }
 0x35a   : > { %p2113_p4 = pnand %p2112_p2, %p2108_p10 }
 0x35c   : > { %2116 = shalt.err (!%p2113_p4)
}
 0x35d   : > { %s2175_s23 = smov 128   ;;  %s2176_s1 = smov 8  }
 0x35e   : > { %1755 = dma.vmem_to_hbm [thread:$0]  (%p2699_p6), %s2624_s11, 2048, %s2622_s16, %s1451_s29, %s2175_s23, %s2175_s23, %s2176_s1  }
 0x35f PF: > { %s1479_s28 = sand.u32 1, %s2151_s24   ;;  %p2700_p12 = scmp.ne.s32.totalorder %s2684_s8, 0 }
 0x360   : > { %p2701_p0 = scmp.ge.s32.totalorder %s2163_s27, 2  ;;  %s1480_s30 = scalar_lea.sflag [#allocation4], %s1479_s28 }
 0x362   : > { %p1772_p5 = pnand %p2701_p0, %p2700_p12 }
 0x364   : > { %p1773_p3 = pneg %p1772_p5 }
 0x366   : > { %2146 = dma.done.wait (%p1773_p3), %s1480_s30, 2048  }
 0x367   : > { %2148 = vsyncadd (%p1773_p3), %s1480_s30, 4294965248  ;;  %p22_p7 = scmp.ge.s32.totalorder %s2300_s17, 4   ;;  %s2702_s24 = smov %s2155_s25 }
 0x368   : > { %s2703_s25 = smov %s2159_s26  ;;  %s2704_s26 = smov %s2310_s20 }
 0x369   : > { %s2705_s27 = smov %s2300_s17  ;;  %24 = sbr.rel (!%p22_p7) target bundleno = 9 (0x9), region = 105 }
 0x36e   :  { %1485 = vsyncpa [#allocation3], 1 }
 0x36f   :  { %1487 = vsyncpa [#allocation3 + $0x1], 1 }
 0x370   :  { %1488 = vsyncpa [#allocation6], 1 }
 0x371   :  { %1489 = vsyncpa [#allocation9], 1 }
 0x372   :  { %1490 = vsyncpa [#allocation4], 1 }
 0x373   :  { %1492 = vsyncpa [#allocation4 + $0x1], 1 }

</bundles_post_ra>
